<compile_context>
chip_gen: v5e
topology: v5e:2x2
jax: 0.10.0
libtpu: 0.0.40
codegen_flags: <defaults>
</compile_context>

<pallas_src>
import jax
import jax.numpy as jnp
from jax.experimental import pallas as pl
from jax.experimental.pallas import tpu as pltpu

_LANES = 512          # wide lane-dense last dim (multiple of 128) -> unmasked vst
_MAX_TILE_ROWS = 512  # 512x512 f32 tile = 1 MiB; x(in+out) x double-buffer = 4 MiB


def _ceil_to(n, m):
    return -(-n // m) * m


def outofbounderror_forward(x, deformation_limit):
    """relu(x**2 - deformation_limit**2), matching the PyTorch module."""
    orig_shape = x.shape
    total = x.size
    lim = float(deformation_limit) ** 2.0

    # --- Flatten + pad to a lane-dense (rows, _LANES) slab, rows % 8 == 0 ---
    flat = x.reshape(-1)
    padded = _ceil_to(total, 8 * _LANES)
    rows = padded // _LANES
    tile_rows = min(_MAX_TILE_ROWS, rows)
    if rows % tile_rows != 0:
        rows = _ceil_to(rows, tile_rows)
        padded = rows * _LANES
    pad = padded - total
    if pad:
        flat = jnp.pad(flat, (0, pad))
    slab = flat.reshape(rows, _LANES)

    # --- Elementwise kernel over row tiles (limit folded in as a constant) ---
    def kernel(x_ref, o_ref):
        xs = x_ref[...]
        o_ref[...] = jnp.maximum(xs * xs - lim, 0.0)

    out = pl.pallas_call(
        kernel,
        out_shape=jax.ShapeDtypeStruct(slab.shape, slab.dtype),
        grid=(rows // tile_rows,),
        in_specs=[pl.BlockSpec((tile_rows, _LANES), lambda i: (i, 0))],
        out_specs=pl.BlockSpec((tile_rows, _LANES), lambda i: (i, 0)),
        compiler_params=pltpu.CompilerParams(
            dimension_semantics=("parallel",)),
    )(slab)

    # --- Strip padding and restore original NCHW shape ---
    out_flat = out.reshape(-1)
    if pad:
        out_flat = out_flat[:total]
    return out_flat.reshape(orig_shape)


if __name__ == "__main__":
    key = jax.random.PRNGKey(0)
    # Small NCHW input consistent with a displacement-field style tensor.
    x = jax.random.normal(key, (2, 4, 16, 16), dtype=jnp.float32) * 2.0
    deformation_limit = 1.5

    y = outofbounderror_forward(x, deformation_limit)
    y = jax.block_until_ready(y)

    # Reference check in plain JAX (same semantics as the PyTorch module).
    ref = jnp.maximum(x**2.0 - deformation_limit**2.0, 0.0)
    assert y.shape == x.shape and y.dtype == x.dtype
    assert jnp.allclose(y, ref, atol=1e-6, rtol=1e-6)

    print("KERNEL_OK")
</pallas_src>

<mosaic_0001>
module attributes {stable_mosaic.version = 11 : i64} {
  func.func @kernel(%arg0: i32, %arg1: memref<8x512xf32, #tpu.memory_space<vmem>>, %arg2: memref<8x512xf32, #tpu.memory_space<vmem>>) attributes {dimension_semantics = [#tpu.dimension_semantics<parallel>], iteration_bounds = array<i64: 1>, scalar_prefetch = 0 : i64, scratch_operands = 0 : i64, tpu.core_type = #tpu.core_type<tc>, window_params = [{transform_indices = @transform_0, window_bounds = array<i64: 8, 512>}, {transform_indices = @transform_1, window_bounds = array<i64: 8, 512>}]} {
    %c0 = arith.constant 0 : index
    %c0_0 = arith.constant 0 : index
    %0 = vector.load %arg1[%c0, %c0_0] : memref<8x512xf32, #tpu.memory_space<vmem>>, vector<8x512xf32>
    %1 = arith.mulf %0, %0 : vector<8x512xf32>
    %cst = arith.constant 2.250000e+00 : f32
    %2 = vector.broadcast %cst : f32 to vector<8x512xf32>
    %3 = arith.subf %1, %2 : vector<8x512xf32>
    %cst_1 = arith.constant 0.000000e+00 : f32
    %4 = vector.broadcast %cst_1 : f32 to vector<8x512xf32>
    %5 = arith.maximumf %3, %4 : vector<8x512xf32>
    %c0_2 = arith.constant 0 : index
    %c0_3 = arith.constant 0 : index
    %6 = vector.load %arg2[%c0_2, %c0_3] : memref<8x512xf32, #tpu.memory_space<vmem>>, vector<8x512xf32>
    tpu.vector_store %arg2[%c0_2, %c0_3], %5 {strides = array<i32>} : memref<8x512xf32, #tpu.memory_space<vmem>>, vector<8x512xf32>,
    return
  }
  func.func @transform_0(%arg0: i32) -> (i32, i32) {
    %c0_i32 = arith.constant 0 : i32
    %c0_i32_0 = arith.constant 0 : i32
    return %arg0, %c0_i32 : i32, i32
  }
  func.func @transform_1(%arg0: i32) -> (i32, i32) {
    %c0_i32 = arith.constant 0 : i32
    %c0_i32_0 = arith.constant 0 : i32
    return %arg0, %c0_i32 : i32, i32
  }
}

</mosaic_0001>

<bundles_post_ra>
// kernel: tpu_custom_call.1
= control target key start
LH: loop header
LB: loop body
LE: loop exit
PB: predicated region body
PF: predicated region fallthrough
CT: control target
= control target key end

     0   :  { %6 = vsyncpa [#allocation3], 0  ;;  %s136_s0 = inlined_call_operand.hbm [shape: f32[8,512], index: 0, kind: input, shape index: {}]   ;;  %s137_s1 = inlined_call_operand.hbm [shape: f32[8,512], index: 1, kind: output, shape index: {}]  }
   0x1   :  { %7 = vsyncpa [#allocation4], 0  ;;  %s13_s8 = sshll.u32 %s136_s0, 4  ;;  %s118_s9 = smov [#allocation2]   ;;  %s14_s8 = int_to_ptr.hbm [resolvable:$true] %s13_s8 }
   0x2   :  { %s15_s10 = sshll.u32 %s118_s9, 4  ;;  %s16_s10 = int_to_ptr.vmem [resolvable:$true] %s15_s10 }
   0x3   :  { %18 = dma.hbm_to_vmem [thread:$0]  %s14_s8, 512, %s16_s10, [#allocation3]  }
   0x4   :  { %114 = dma.done.wait [#allocation3], 512  }
   0x5   :  { %115 = vsyncadd [#allocation3], 4294966784  ;;  %v23_v0 = vld [vmem:[#allocation2] sm:$0xff]  ;;  %v24_v1 = vld [vmem:[#allocation2 + $0x8] sm:$0xff]  ;;  %s119_s0 = smov [#allocation5]   ;;  %s50_s14 = sshll.u32 %s137_s1, 4  ;;  %s51_s14 = int_to_ptr.hbm [resolvable:$true] %s50_s14 }
   0x6   :  { %v25_v2 = vld [vmem:[#allocation2 + $0x10] sm:$0xff]  ;;  %v27_v3 = vmul.f32 %v23_v0, %v23_v0  ;;  %v28_v4 = vmul.f32 %v24_v1, %v24_v1  ;;  %v26_v6 = vld [vmem:[#allocation2 + $0x18] sm:$0xff]  ;;  %s48_s11 = sshll.u32 %s119_s0, 4  ;;  %s49_s11 = int_to_ptr.vmem [resolvable:$true] %s48_s11 }
   0x7   :  { %v29_v5 = vmul.f32 %v25_v2, %v25_v2  ;;  %v30_v7 = vmul.f32 %v26_v6, %v26_v6 }
   0x8   :  { %v60_v8 = vadd.f32 -2.25, %v27_v3  ;;  %v61_v9 = vadd.f32 -2.25, %v28_v4 }
   0x9   :  { %v62_v10 = vadd.f32 -2.25, %v29_v5  ;;  %v63_v11 = vadd.f32 -2.25, %v30_v7 }
   0xa   :  { %v35_v12 = vmax.f32 %v60_v8, 0.0  ;;  %v36_v13 = vmax.f32 %v61_v9, 0.0 }
   0xb   :  { %v37_v14 = vmax.f32 %v62_v10, 0.0  ;;  %v38_v15 = vmax.f32 %v63_v11, 0.0 }
   0xc   :  { %39 = vst [vmem:[#allocation5] sm:$0xff] %v35_v12 }
   0xd   :  { %40 = vst [vmem:[#allocation5 + $0x8] sm:$0xff] %v36_v13 }
   0xe   :  { %41 = vst [vmem:[#allocation5 + $0x10] sm:$0xff] %v37_v14 }
   0xf   :  { %42 = vst [vmem:[#allocation5 + $0x18] sm:$0xff] %v38_v15 }
  0x10   :  { %53 = dma.vmem_to_hbm [thread:$0]  %s49_s11, 512, %s51_s14, [#allocation4]  }
  0x11   :  { %116 = dma.done.wait [#allocation4], 512  }
  0x12   :  { %117 = vsyncadd [#allocation4], 4294966784 }
  0x13   :  { %58 = vsyncpa [#allocation3], 1 }
  0x14   :  { %59 = vsyncpa [#allocation4], 1 }

</bundles_post_ra>
